<compile_context>
chip_gen: v7x
topology: tpu7x:2x2x1
jax: 0.10.0
libtpu: 0.0.40
codegen_flags: <defaults>
</compile_context>

<pallas_src>
import functools

import numpy as np
import jax
import jax.numpy as jnp
from jax.experimental import pallas as pl
from jax.experimental.pallas import tpu as pltpu

EMB_DIM = 128
NUM_TOK = 6
HIDDEN = 128
LANE = 128
NEG_BIG = -1e30


def _round_up(x, m):
    return ((x + m - 1) // m) * m


def dependency_kernel(idx_ref, wfold_ref, b1_ref, w2_ref, b2_ref, out_ref):
    # idx_ref: (TB, 6) int32, pre-shifted (idx[:, t] + t*V) in the wrapper.
    idx = idx_ref[...]
    TB = idx.shape[0]
    C = wfold_ref.shape[0]                   # 6 * V

    # One-hot over the folded (token, vocab) axis: 6 disjoint compares OR-ed on
    # a lane-dense (TB, 6*V) iota, one cast -- no per-token matmuls.
    c_iota = jax.lax.broadcasted_iota(jnp.int32, (TB, C), 1)
    mask = c_iota == idx[:, 0:1]
    for t in range(1, NUM_TOK):
        mask = mask | (c_iota == idx[:, t:t + 1])
    onehot = mask.astype(jnp.float32)

    # gather + fc1 fused into a single MXU matmul (f32 in/out), then relu.
    h = jnp.maximum(
        jnp.dot(onehot, wfold_ref[...], preferred_element_type=jnp.float32)
        + b1_ref[...],
        0.0)

    # fc2 on the lane-dense padded class dim (padded columns biased to -1e30).
    logits = jnp.dot(h, w2_ref[...], preferred_element_type=jnp.float32) + b2_ref[...]

    # log_softmax over the class axis (PyTorch default dim=1 for 2-D input).
    # exp(-1e30 - m) underflows to exactly 0 in f32, so padded columns do not
    # perturb the real classes.
    m = jnp.max(logits, axis=-1, keepdims=True)
    shifted = logits - m
    lse = jnp.log(jnp.sum(jnp.exp(shifted), axis=-1, keepdims=True))
    out_ref[...] = shifted - lse


def make_dependency_forward(emb, w1, b1, w2, b2, *, batch_tile=128):
    """Prepare a jitted forward closure: weights are folded/padded exactly once."""
    V = emb.shape[0]
    O = w2.shape[1]
    O_pad = _round_up(O, LANE)
    C = NUM_TOK * V

    hi = jax.lax.Precision.HIGHEST
    # Fold the embedding table into fc1: Wfold[t] = emb @ w1[t] -> (6*V, 128).
    wfold_flat = jnp.einsum("ve,teh->tvh", emb, w1, precision=hi).reshape(C, HIDDEN)
    # Pad the class dim to a lane-dense multiple of 128 (bias -> -1e30 on pads).
    w2_pad = jnp.pad(w2, ((0, 0), (0, O_pad - O)))
    b2_pad = jnp.pad(b2, ((0, 0), (0, O_pad - O)), constant_values=NEG_BIG)
    b1_r = b1.reshape(1, HIDDEN)
    # Per-token column offsets, added to the indices once in the wrapper.
    offsets = (jnp.arange(NUM_TOK, dtype=jnp.int32) * V)[None, :]

    @jax.jit
    def forward(inputs):
        B = inputs.shape[0]
        TB = batch_tile if B >= batch_tile else _round_up(B, 8)
        B_pad = _round_up(B, TB)
        grid = (B_pad // TB,)

        idx = inputs.astype(jnp.int32) + offsets               # (B, 6) pre-shifted
        idx = jnp.pad(idx, ((0, B_pad - B), (0, 0)))            # pad rows (index 0 is valid)

        cost = pl.CostEstimate(
            flops=2 * B_pad * (C * HIDDEN + HIDDEN * O_pad),
            transcendentals=B_pad * O_pad,
            bytes_accessed=(idx.size * 4 + wfold_flat.size * 4 + b1_r.size * 4
                            + w2_pad.size * 4 + b2_pad.size * 4 + B_pad * O_pad * 4),
        )

        out_pad = pl.pallas_call(
            dependency_kernel,
            out_shape=jax.ShapeDtypeStruct((B_pad, O_pad), jnp.float32),
            grid_spec=pltpu.PrefetchScalarGridSpec(
                num_scalar_prefetch=0,
                grid=grid,
                in_specs=[
                    # batch-tiled indices
                    pl.BlockSpec((TB, NUM_TOK), lambda i: (i, 0)),
                    # weights: same block every step -> DMA'd once, VMEM-resident
                    pl.BlockSpec((C, HIDDEN), lambda i: (0, 0)),
                    pl.BlockSpec((1, HIDDEN), lambda i: (0, 0)),
                    pl.BlockSpec((HIDDEN, O_pad), lambda i: (0, 0)),
                    pl.BlockSpec((1, O_pad), lambda i: (0, 0)),
                ],
                out_specs=pl.BlockSpec((TB, O_pad), lambda i: (i, 0)),
            ),
            compiler_params=pltpu.CompilerParams(
                dimension_semantics=("parallel",)),   # v7x: split batch grid over 2 TCs
            cost_estimate=cost,
        )(idx, wfold_flat, b1_r, w2_pad, b2_pad)
        return out_pad[:B, :O]

    return forward


def reference_forward(inputs, emb, w1, b1, w2, b2):
    # pure-JAX reference mirroring the PyTorch forward
    hi = jax.lax.Precision.HIGHEST
    e = emb[inputs]                                        # (B, 6, 128)
    flat = e.reshape(e.shape[0], -1)                       # (B, 768)
    w1_flat = w1.reshape(NUM_TOK * EMB_DIM, HIDDEN)        # (768, 128)
    h = jnp.maximum(jnp.dot(flat, w1_flat, precision=hi) + b1, 0.0)
    logits = jnp.dot(h, w2, precision=hi) + b2
    return jax.nn.log_softmax(logits, axis=-1)


if __name__ == "__main__":
    word_types = 64
    outputs = 91
    batch = 8

    key = jax.random.PRNGKey(0)
    k_in, k_emb, k_w1, k_b1, k_w2, k_b2 = jax.random.split(key, 6)

    # deterministic parameter init (PyTorch-like scales)
    inputs = jax.random.randint(k_in, (batch, NUM_TOK), 0, word_types, dtype=jnp.int32)
    emb = jax.random.normal(k_emb, (word_types, EMB_DIM), dtype=jnp.float32)

    bound1 = 1.0 / np.sqrt(NUM_TOK * EMB_DIM)
    w1 = jax.random.uniform(k_w1, (NUM_TOK, EMB_DIM, HIDDEN), jnp.float32,
                            minval=-bound1, maxval=bound1)
    b1 = jax.random.uniform(k_b1, (1, HIDDEN), jnp.float32,
                            minval=-bound1, maxval=bound1)

    bound2 = 1.0 / np.sqrt(HIDDEN)
    w2 = jax.random.uniform(k_w2, (HIDDEN, outputs), jnp.float32,
                            minval=-bound2, maxval=bound2)
    b2 = jax.random.uniform(k_b2, (1, outputs), jnp.float32,
                            minval=-bound2, maxval=bound2)

    # Fold/pad weights once, get a jitted forward closure.
    forward = make_dependency_forward(emb, w1, b1, w2, b2)

    out = forward(inputs)
    out = jax.block_until_ready(out)

    ref = reference_forward(inputs, emb, w1, b1, w2, b2)
    np.testing.assert_allclose(np.asarray(out), np.asarray(ref), rtol=1e-5, atol=2e-5)

    print("KERNEL_OK")
</pallas_src>

<mosaic_0001>
module attributes {stable_mosaic.version = 11 : i64} {
  func.func @dependency_kernel(%arg0: i32, %arg1: memref<8x6xi32, #tpu.memory_space<vmem>>, %arg2: memref<384x128xf32, #tpu.memory_space<vmem>>, %arg3: memref<1x128xf32, #tpu.memory_space<vmem>>, %arg4: memref<128x128xf32, #tpu.memory_space<vmem>>, %arg5: memref<1x128xf32, #tpu.memory_space<vmem>>, %arg6: memref<8x128xf32, #tpu.memory_space<vmem>>) attributes {dimension_semantics = [#tpu.dimension_semantics<parallel>], iteration_bounds = array<i64: 1>, scalar_prefetch = 0 : i64, scratch_operands = 0 : i64, tpu.core_type = #tpu.core_type<tc>, window_params = [{transform_indices = @transform_0, window_bounds = array<i64: 8, 6>}, {pipeline_mode = #tpu.pipeline_mode<synchronous>, transform_indices = @transform_1, window_bounds = array<i64: 384, 128>}, {pipeline_mode = #tpu.pipeline_mode<synchronous>, transform_indices = @transform_2, window_bounds = array<i64: 1, 128>}, {pipeline_mode = #tpu.pipeline_mode<synchronous>, transform_indices = @transform_3, window_bounds = array<i64: 128, 128>}, {pipeline_mode = #tpu.pipeline_mode<synchronous>, transform_indices = @transform_4, window_bounds = array<i64: 1, 128>}, {transform_indices = @transform_5, window_bounds = array<i64: 8, 128>}]} {
    %c0 = arith.constant 0 : index
    %c0_0 = arith.constant 0 : index
    %0 = vector.load %arg1[%c0, %c0_0] : memref<8x6xi32, #tpu.memory_space<vmem>>, vector<8x6xi32>
    %1 = tpu.iota {dimensions = array<i32: 1>} : vector<8x384xi32>
    %2 = vector.extract_strided_slice %0 {offsets = [0, 0], sizes = [8, 1], strides = [1, 1]} : vector<8x6xi32> to vector<8x1xi32>
    %3 = vector.broadcast %2 : vector<8x1xi32> to vector<8x384xi32>
    %4 = arith.cmpi eq, %1, %3 : vector<8x384xi32>
    %5 = vector.extract_strided_slice %0 {offsets = [0, 1], sizes = [8, 1], strides = [1, 1]} : vector<8x6xi32> to vector<8x1xi32>
    %6 = vector.broadcast %5 : vector<8x1xi32> to vector<8x384xi32>
    %7 = arith.cmpi eq, %1, %6 : vector<8x384xi32>
    %8 = arith.ori %4, %7 : vector<8x384xi1>
    %9 = vector.extract_strided_slice %0 {offsets = [0, 2], sizes = [8, 1], strides = [1, 1]} : vector<8x6xi32> to vector<8x1xi32>
    %10 = vector.broadcast %9 : vector<8x1xi32> to vector<8x384xi32>
    %11 = arith.cmpi eq, %1, %10 : vector<8x384xi32>
    %12 = arith.ori %8, %11 : vector<8x384xi1>
    %13 = vector.extract_strided_slice %0 {offsets = [0, 3], sizes = [8, 1], strides = [1, 1]} : vector<8x6xi32> to vector<8x1xi32>
    %14 = vector.broadcast %13 : vector<8x1xi32> to vector<8x384xi32>
    %15 = arith.cmpi eq, %1, %14 : vector<8x384xi32>
    %16 = arith.ori %12, %15 : vector<8x384xi1>
    %17 = vector.extract_strided_slice %0 {offsets = [0, 4], sizes = [8, 1], strides = [1, 1]} : vector<8x6xi32> to vector<8x1xi32>
    %18 = vector.broadcast %17 : vector<8x1xi32> to vector<8x384xi32>
    %19 = arith.cmpi eq, %1, %18 : vector<8x384xi32>
    %20 = arith.ori %16, %19 : vector<8x384xi1>
    %21 = vector.extract_strided_slice %0 {offsets = [0, 5], sizes = [8, 1], strides = [1, 1]} : vector<8x6xi32> to vector<8x1xi32>
    %22 = vector.broadcast %21 : vector<8x1xi32> to vector<8x384xi32>
    %23 = arith.cmpi eq, %1, %22 : vector<8x384xi32>
    %24 = arith.ori %20, %23 : vector<8x384xi1>
    %25 = arith.extui %24 : vector<8x384xi1> to vector<8x384xi32>
    %26 = arith.sitofp %25 : vector<8x384xi32> to vector<8x384xf32>
    %c0_1 = arith.constant 0 : index
    %c0_2 = arith.constant 0 : index
    %27 = vector.load %arg2[%c0_1, %c0_2] : memref<384x128xf32, #tpu.memory_space<vmem>>, vector<384x128xf32>
    %cst = arith.constant dense<0.000000e+00> : vector<8x128xf32>
    %28 = tpu.matmul %26, %27, %cst {dimension_numbers = #tpu.dot_dimension_numbers<[1], [0], [0], [1], [0, 0, 1, 1], [], []>} : vector<8x384xf32>, vector<384x128xf32>, vector<8x128xf32> -> vector<8x128xf32>
    %c0_3 = arith.constant 0 : index
    %c0_4 = arith.constant 0 : index
    %29 = vector.load %arg3[%c0_3, %c0_4] : memref<1x128xf32, #tpu.memory_space<vmem>>, vector<1x128xf32>
    %30 = vector.broadcast %29 : vector<1x128xf32> to vector<8x128xf32>
    %31 = arith.addf %28, %30 : vector<8x128xf32>
    %cst_5 = arith.constant 0.000000e+00 : f32
    %32 = vector.broadcast %cst_5 : f32 to vector<8x128xf32>
    %33 = arith.maximumf %31, %32 : vector<8x128xf32>
    %c0_6 = arith.constant 0 : index
    %c0_7 = arith.constant 0 : index
    %34 = vector.load %arg4[%c0_6, %c0_7] : memref<128x128xf32, #tpu.memory_space<vmem>>, vector<128x128xf32>
    %cst_8 = arith.constant dense<0.000000e+00> : vector<8x128xf32>
    %35 = tpu.matmul %33, %34, %cst_8 {dimension_numbers = #tpu.dot_dimension_numbers<[1], [0], [0], [1], [0, 0, 1, 1], [], []>} : vector<8x128xf32>, vector<128x128xf32>, vector<8x128xf32> -> vector<8x128xf32>
    %c0_9 = arith.constant 0 : index
    %c0_10 = arith.constant 0 : index
    %36 = vector.load %arg5[%c0_9, %c0_10] : memref<1x128xf32, #tpu.memory_space<vmem>>, vector<1x128xf32>
    %37 = vector.broadcast %36 : vector<1x128xf32> to vector<8x128xf32>
    %38 = arith.addf %35, %37 : vector<8x128xf32>
    %cst_11 = arith.constant dense<0xFF800000> : vector<8xf32>
    %39 = vector.multi_reduction <maximumf>, %38, %cst_11 [1] : vector<8x128xf32> to vector<8xf32>
    %40 = vector.shape_cast %39 : vector<8xf32> to vector<8x1xf32>
    %41 = vector.broadcast %40 : vector<8x1xf32> to vector<8x128xf32>
    %42 = arith.subf %38, %41 : vector<8x128xf32>
    %43 = math.exp %42 : vector<8x128xf32>
    %cst_12 = arith.constant dense<0.000000e+00> : vector<8xf32>
    %44 = vector.multi_reduction <add>, %43, %cst_12 [1] : vector<8x128xf32> to vector<8xf32>
    %45 = vector.shape_cast %44 : vector<8xf32> to vector<8x1xf32>
    %46 = math.log %45 : vector<8x1xf32>
    %47 = vector.broadcast %46 : vector<8x1xf32> to vector<8x128xf32>
    %48 = arith.subf %42, %47 : vector<8x128xf32>
    %c0_13 = arith.constant 0 : index
    %c0_14 = arith.constant 0 : index
    %49 = vector.load %arg6[%c0_13, %c0_14] : memref<8x128xf32, #tpu.memory_space<vmem>>, vector<8x128xf32>
    tpu.vector_store %arg6[%c0_13, %c0_14], %48 {strides = array<i32>} : memref<8x128xf32, #tpu.memory_space<vmem>>, vector<8x128xf32>,
    return
  }
  func.func @transform_0(%arg0: i32) -> (i32, i32) {
    %c0_i32 = arith.constant 0 : i32
    %c0_i32_0 = arith.constant 0 : i32
    return %arg0, %c0_i32 : i32, i32
  }
  func.func @transform_1(%arg0: i32) -> (i32, i32) {
    %c0_i32 = arith.constant 0 : i32
    %c0_i32_0 = arith.constant 0 : i32
    %c0_i32_1 = arith.constant 0 : i32
    return %c0_i32, %c0_i32_0 : i32, i32
  }
  func.func @transform_2(%arg0: i32) -> (i32, i32) {
    %c0_i32 = arith.constant 0 : i32
    %c0_i32_0 = arith.constant 0 : i32
    %c0_i32_1 = arith.constant 0 : i32
    return %c0_i32, %c0_i32_0 : i32, i32
  }
  func.func @transform_3(%arg0: i32) -> (i32, i32) {
    %c0_i32 = arith.constant 0 : i32
    %c0_i32_0 = arith.constant 0 : i32
    %c0_i32_1 = arith.constant 0 : i32
    return %c0_i32, %c0_i32_0 : i32, i32
  }
  func.func @transform_4(%arg0: i32) -> (i32, i32) {
    %c0_i32 = arith.constant 0 : i32
    %c0_i32_0 = arith.constant 0 : i32
    %c0_i32_1 = arith.constant 0 : i32
    return %c0_i32, %c0_i32_0 : i32, i32
  }
  func.func @transform_5(%arg0: i32) -> (i32, i32) {
    %c0_i32 = arith.constant 0 : i32
    %c0_i32_0 = arith.constant 0 : i32
    return %arg0, %c0_i32 : i32, i32
  }
}

</mosaic_0001>

<bundles_post_ra>
// kernel: forward.1
= control target key start
LH: loop header
LB: loop body
LE: loop exit
PB: predicated region body
PF: predicated region fallthrough
CT: control target
= control target key end

     0   :  { %10 = vsyncpa [#allocation3], 0  ;;  %s865_s0 = inlined_call_operand.vmem [shape: s32[8,6], index: 0, kind: input, shape index: {}]   ;;  %s866_s1 = inlined_call_operand.hbm [shape: f32[384,128], index: 1, kind: input, shape index: {}]   ;;  %s867_s2 = inlined_call_operand.vmem [shape: f32[1,128], index: 2, kind: input, shape index: {}]   ;;  %s868_s3 = inlined_call_operand.hbm [shape: f32[128,128], index: 3, kind: input, shape index: {}]   ;;  %s869_s4 = inlined_call_operand.vmem [shape: f32[1,128], index: 4, kind: input, shape index: {}]   ;;  %s870_s5 = inlined_call_operand.hbm [shape: f32[8,128], index: 5, kind: output, shape index: {}]  }
   0x1   :  { %11 = vsyncpa [#allocation6], 0 }
   0x2   :  { %12 = vsyncpa [#allocation4], 0  ;;  %s747_s18 = smov [#allocation2]   ;;  %s675_s22 = scalar_lea.hbm %s866_s1, 6144 }
   0x3   :  { %s20_s19 = sshll.u32 %s747_s18, 4  ;;  %p676_p0 = scmp.ne.s32.totalorder %s866_s1, %s675_s22  ;;  %s21_s19 = int_to_ptr.vmem [resolvable:$true] %s20_s19 }
   0x4   :  { %p679_p1 = scmp.lt.u32.totalorder %s675_s22, %s866_s1 }
   0x6   :  { %p681_p2 = pnand %p679_p1, %p676_p0 }
   0x8   :  { %684 = shalt.err (!%p681_p2)
}
   0x9   :  { %s685_s27 = scalar_lea.vmem %s21_s19, 6144  ;;  %p690_p4 = scmp.lt.s32.totalorder %s21_s19, %s21_s19 }
   0xa   :  { %p686_p3 = scmp.ne.s32.totalorder %s21_s19, %s685_s27  ;;  %p691_p5 = scmp.lt.s32.totalorder %s685_s27, %s685_s27 }
   0xc   :  { %p692_p6 = por %p691_p5, %p690_p4 }
   0xe   :  { %p693_p7 = pnand %p692_p6, %p686_p3 }
  0x10   :  { %696 = shalt.err (!%p693_p7)
}
  0x11   :  { %s748_s28 = smov 128   ;;  %s749_s29 = smov 8  }
  0x12   :  { %26 = dma.hbm_to_vmem [thread:$0]  %s866_s1, 6144, %s21_s19, [#allocation3], %s748_s28, %s748_s28, %s749_s29  }
  0x13   :  { %s750_s7 = smov [#allocation5]   ;;  %s697_s11 = scalar_lea.hbm %s868_s3, 2048 }
  0x14   :  { %s34_s8 = sshll.u32 %s750_s7, 4  ;;  %p698_p8 = scmp.ne.s32.totalorder %s868_s3, %s697_s11  ;;  %s35_s8 = int_to_ptr.vmem [resolvable:$true] %s34_s8 }
  0x15   :  { %p701_p9 = scmp.lt.u32.totalorder %s697_s11, %s868_s3 }
  0x17   :  { %p703_p10 = pnand %p701_p9, %p698_p8 }
  0x19   :  { %706 = shalt.err (!%p703_p10)
}
  0x1a   :  { %s707_s16 = scalar_lea.vmem %s35_s8, 2048  ;;  %p712_p12 = scmp.lt.s32.totalorder %s35_s8, %s35_s8 }
  0x1b   :  { %p708_p11 = scmp.ne.s32.totalorder %s35_s8, %s707_s16  ;;  %p713_p13 = scmp.lt.s32.totalorder %s707_s16, %s707_s16 }
  0x1d   :  { %p714_p0 = por %p713_p13, %p712_p12 }
  0x1f   :  { %p715_p1 = pnand %p714_p0, %p708_p11 }
  0x21   :  { %718 = shalt.err (!%p715_p1)
}
  0x22   :  { %40 = dma.hbm_to_vmem [thread:$0]  %s868_s3, 2048, %s35_s8, [#allocation6], %s748_s28, %s748_s28, %s749_s29  }
  0x23   :  { %741 = dma.done.wait [#allocation3], 6144  }
  0x24   :  { %742 = vsyncadd [#allocation3], 4294961152 }
  0x25   :  { %743 = dma.done.wait [#allocation6], 2048  }
  0x26   :  { %744 = vsyncadd [#allocation6], 4294965248  ;;  %v751_v0 = vmov 2   ;;  %v752_v1 = vmov 0   ;;  %v753_v2 = vmov 0.0|0.0   ;;  %v49_v3 = vld [vmem:[%s865_s0] sm:$0xff] }
  0x27   :  { %667 = vset.pattern.permute.xlu1 %v751_v0  ;;  %665 = vset.pattern.permute.xlu0 %v752_v1  ;;  %v127_v4 = vld [vmem:[#allocation2 + $0x80] sm:$0xff]  ;;  %v128_v5 = vld [vmem:[#allocation2 + $0x88] sm:$0xff]  ;;  %v129_v12 = vld [vmem:[#allocation2 + $0x90] sm:$0xff]  ;;  %v754_v20 = vmov 3   ;;  %v755_v21 = vmov 1   ;;  %v756_v34 = vmov 4  }
  0x28   :  { %603 = vmatprep.subr.bf16.mxu1 %v753_v2  ;;  %70 = vperm.xlu1 %667, %v49_v3   ;;  %v571_v6 = vpack.c.bf16 %v128_v5, %v127_v4  ;;  %v143_v7 = vld [vmem:[#allocation2 + $0x100] sm:$0xff]  ;;  %v144_v8 = vld [vmem:[#allocation2 + $0x108] sm:$0xff]  ;;  %v130_v13 = vld [vmem:[#allocation2 + $0x98] sm:$0xff]  ;;  %v757_v35 = vmov 5   ;;  %vm871_vm0 = vmmov 0   ;;  %v759_v47 = vmov 0.0  }
  0x29   :  { %55 = vperm.xlu0 %665, %v49_v3   ;;  %v111_v9 = vld [vmem:[#allocation2] sm:$0xff]  ;;  %v604_v10 = vpack.c.bf16 %v144_v8, %v143_v7  ;;  %v112_v11 = vld [vmem:[#allocation2 + $0x8] sm:$0xff]  ;;  %v145_v15 = vld [vmem:[#allocation2 + $0x110] sm:$0xff]  ;;  %v575_v17 = vpack.c.bf16 %v130_v13, %v129_v12  ;;  %533 = vmatprep.mubr.msk.f32.mxu1 %vm871_vm0, %v759_v47 }
  0x2a   :  { %572 = vmatprep.subr.bf16.mxu0 %v571_v6  ;;  %v573_v14 = vpack.c.bf16 %v112_v11, %v111_v9  ;;  %v146_v16 = vld [vmem:[#allocation2 + $0x118] sm:$0xff]  ;;  %v113_v19 = vld [vmem:[#allocation2 + $0x10] sm:$0xff]  ;;  %v147_v23 = vld [vmem:[#allocation2 + $0x120] sm:$0xff] }
  0x2b   :  { %605 = vmatpush3.bf16.msra.mxu1 %v604_v10  ;;  %v607_v18 = vpack.c.bf16 %v146_v16, %v145_v15  ;;  %v114_v22 = vld [vmem:[#allocation2 + $0x18] sm:$0xff]  ;;  %v148_v24 = vld [vmem:[#allocation2 + $0x128] sm:$0xff]  ;;  %v131_v25 = vld [vmem:[#allocation2 + $0xa0] sm:$0xff] }
  0x2c   :  { %668 = vset.pattern.permute.xlu1 %v754_v20  ;;  %v132_v26 = vld [vmem:[#allocation2 + $0xa8] sm:$0xff]  ;;  %574 = vmatpush3.bf16.msra.mxu0 %v573_v14  ;;  %v577_v27 = vpack.c.bf16 %v114_v22, %v113_v19  ;;  %v610_v28 = vpack.c.bf16 %v148_v24, %v147_v23  ;;  %v115_v29 = vld [vmem:[#allocation2 + $0x20] sm:$0xff]  ;;  %v149_v32 = vld [vmem:[#allocation2 + $0x130] sm:$0xff] }
  0x2d   :  { %666 = vset.pattern.permute.xlu0 %v755_v21  ;;  %79 = vperm.xlu1 %668, %v49_v3   ;;  %v579_v30 = vpack.c.bf16 %v132_v26, %v131_v25  ;;  %v116_v31 = vld [vmem:[#allocation2 + $0x28] sm:$0xff]  ;;  %v150_v33 = vld [vmem:[#allocation2 + $0x138] sm:$0xff]  ;;  %v133_v36 = vld [vmem:[#allocation2 + $0xb0] sm:$0xff]  ;;  %v872_v26 = vmov 0 }
  0x2e   :  { %61 = vperm.xlu0 %666, %v49_v3   ;;  %606 = vmatprep.subr.bf16.mxu1 %v753_v2  ;;  %v134_v37 = vld [vmem:[#allocation2 + $0xb8] sm:$0xff]  ;;  %v581_v38 = vpack.c.bf16 %v116_v31, %v115_v29  ;;  %v613_v39 = vpack.c.bf16 %v150_v33, %v149_v32  ;;  %v117_v40 = vld [vmem:[#allocation2 + $0x30] sm:$0xff]  ;;  %v151_v43 = vld [vmem:[#allocation2 + $0x140] sm:$0xff] }
  0x2f   :  { %576 = vmatprep.subr.bf16.mxu0 %v575_v17  ;;  %608 = vmatpush3.bf16.msra.mxu1 %v607_v18  ;;  %v583_v41 = vpack.c.bf16 %v134_v37, %v133_v36  ;;  %v118_v42 = vld [vmem:[#allocation2 + $0x38] sm:$0xff]  ;;  %v152_v44 = vld [vmem:[#allocation2 + $0x148] sm:$0xff]  ;;  %v135_v45 = vld [vmem:[#allocation2 + $0xc0] sm:$0xff]  ;;  %v50_v18 = vlaneseq }
  0x30   :  { %609 = vmatprep.subr.bf16.mxu1 %v753_v2  ;;  %578 = vmatpush3.bf16.msra.mxu0 %v577_v27  ;;  %v136_v46 = vld [vmem:[#allocation2 + $0xc8] sm:$0xff]  ;;  %v585_v48 = vpack.c.bf16 %v118_v42, %v117_v40  ;;  %v616_v49 = vpack.c.bf16 %v152_v44, %v151_v43  ;;  %v119_v50 = vld [vmem:[#allocation2 + $0x40] sm:$0xff]  ;;  %v153_v53 = vld [vmem:[#allocation2 + $0x150] sm:$0xff] }
  0x31   :  { %669 = vset.pattern.permute.xlu1 %v756_v34  ;;  %580 = vmatprep.subr.bf16.mxu0 %v579_v30  ;;  %v587_v51 = vpack.c.bf16 %v136_v46, %v135_v45  ;;  %v120_v52 = vld [vmem:[#allocation2 + $0x48] sm:$0xff]  ;;  %v154_v54 = vld [vmem:[#allocation2 + $0x158] sm:$0xff]  ;;  %v137_v55 = vld [vmem:[#allocation2 + $0xd0] sm:$0xff]  ;;  %v51_v19 = vand.u32 127, %v50_v18 }
  0x32   :  { %670 = vset.pattern.permute.xlu0 %v757_v35  ;;  %88 = vperm.xlu1 %669, %v49_v3   ;;  %v138_v56 = vld [vmem:[#allocation2 + $0xd8] sm:$0xff]  ;;  %v589_v57 = vpack.c.bf16 %v120_v52, %v119_v50  ;;  %v619_v58 = vpack.c.bf16 %v154_v54, %v153_v53  ;;  %v121_v59 = vld [vmem:[#allocation2 + $0x50] sm:$0xff]  ;;  %v155_v62 = vld [vmem:[#allocation2 + $0x160] sm:$0xff] }
  0x33   :  { %97 = vperm.xlu0 %670, %v49_v3   ;;  %611 = vmatpush3.bf16.msra.mxu1 %v610_v28  ;;  %v591_v60 = vpack.c.bf16 %v138_v56, %v137_v55  ;;  %v122_v61 = vld [vmem:[#allocation2 + $0x58] sm:$0xff]  ;;  %v156_v63 = vld [vmem:[#allocation2 + $0x168] sm:$0xff]  ;;  %v139_v0 = vld [vmem:[#allocation2 + $0xe0] sm:$0xff]  ;;  %v52_v22 = vadd.s32 128, %v51_v19  ;;  %v53_v23 = vadd.s32 256, %v51_v19 }
  0x34   :  { %612 = vmatprep.subr.bf16.mxu1 %v753_v2  ;;  %582 = vmatpush3.bf16.msra.mxu0 %v581_v38  ;;  %v140_v1 = vld [vmem:[#allocation2 + $0xe8] sm:$0xff]  ;;  %v593_v3 = vpack.c.bf16 %v122_v61, %v121_v59  ;;  %v622_v4 = vpack.c.bf16 %v156_v63, %v155_v62  ;;  %v123_v5 = vld [vmem:[#allocation2 + $0x60] sm:$0xff]  ;;  %v157_v8 = vld [vmem:[#allocation2 + $0x170] sm:$0xff] }
  0x35   :  { %584 = vmatprep.subr.bf16.mxu0 %v583_v41  ;;  %v595_v6 = vpack.c.bf16 %v140_v1, %v139_v0  ;;  %v124_v7 = vld [vmem:[#allocation2 + $0x68] sm:$0xff]  ;;  %v158_v9 = vld [vmem:[#allocation2 + $0x178] sm:$0xff]  ;;  %v141_v10 = vld [vmem:[#allocation2 + $0xf0] sm:$0xff] }
  0x36   :  { %v142_v11 = vld [vmem:[#allocation2 + $0xf8] sm:$0xff]  ;;  %v597_v12 = vpack.c.bf16 %v124_v7, %v123_v5  ;;  %v625_v13 = vpack.c.bf16 %v158_v9, %v157_v8  ;;  %v125_v15 = vld [vmem:[#allocation2 + $0x70] sm:$0xff]  ;;  %v307_v30 = vld [vmem:[#allocation5] sm:$0xff] }
  0x37   :  { %614 = vmatpush3.bf16.msra.mxu1 %v613_v39  ;;  %v599_v14 = vpack.c.bf16 %v142_v11, %v141_v10  ;;  %v126_v16 = vld [vmem:[#allocation2 + $0x78] sm:$0xff]  ;;  %v308_v31 = vld [vmem:[#allocation5 + $0x8] sm:$0xff]  ;;  %v309_v34 = vld [vmem:[#allocation5 + $0x10] sm:$0xff] }
  0x38   :  { %615 = vmatprep.subr.bf16.mxu1 %v753_v2  ;;  %586 = vmatpush3.bf16.msra.mxu0 %v585_v48  ;;  %v601_v17 = vpack.c.bf16 %v126_v16, %v125_v15  ;;  %v628_v33 = vpack.c.bf16 %v308_v31, %v307_v30  ;;  %v310_v35 = vld [vmem:[#allocation5 + $0x18] sm:$0xff]  ;;  %v311_v38 = vld [vmem:[#allocation5 + $0x20] sm:$0xff]  ;;  %v312_v39 = vld [vmem:[#allocation5 + $0x28] sm:$0xff] }
  0x39   :  { %588 = vmatprep.subr.bf16.mxu0 %v587_v51  ;;  %v631_v37 = vpack.c.bf16 %v310_v35, %v309_v34  ;;  %v634_v40 = vpack.c.bf16 %v312_v39, %v311_v38  ;;  %v313_v41 = vld [vmem:[#allocation5 + $0x30] sm:$0xff]  ;;  %v314_v42 = vld [vmem:[#allocation5 + $0x38] sm:$0xff]  ;;  %v315_v44 = vld [vmem:[#allocation5 + $0x40] sm:$0xff] }
  0x3a   :  { %v637_v43 = vpack.c.bf16 %v314_v42, %v313_v41  ;;  %v316_v45 = vld [vmem:[#allocation5 + $0x48] sm:$0xff]  ;;  %v318_v48 = vld [vmem:[#allocation5 + $0x58] sm:$0xff]  ;;  %v319_v50 = vld [vmem:[#allocation5 + $0x60] sm:$0xff] }
  0x3b   :  { %617 = vmatpush3.bf16.msra.mxu1 %v616_v49  ;;  %v640_v46 = vpack.c.bf16 %v316_v45, %v315_v44  ;;  %v320_v51 = vld [vmem:[#allocation5 + $0x68] sm:$0xff]  ;;  %v321_v53 = vld [vmem:[#allocation5 + $0x70] sm:$0xff]  ;;  %v322_v54 = vld [vmem:[#allocation5 + $0x78] sm:$0xff] }
  0x3c   :  { %618 = vmatprep.subr.bf16.mxu1 %v753_v2  ;;  %590 = vmatpush3.bf16.msra.mxu0 %v589_v57  ;;  %v646_v52 = vpack.c.bf16 %v320_v51, %v319_v50  ;;  %v649_v55 = vpack.c.bf16 %v322_v54, %v321_v53  ;;  %v430_v59 = vld [vmem:[%s867_s2] ss:$0 sm:$0xff]  ;;  %s760_s2 = smov [#allocation7]  }
  0x3d   :  { %592 = vmatprep.subr.bf16.mxu0 %v591_v60  ;;  %s417_s22 = sshll.u32 %s760_s2, 4  ;;  %s418_s22 = int_to_ptr.vmem [resolvable:$true] %s417_s22 }
  0x3e   :  { %p724_p3 = scmp.lt.s32.totalorder %s418_s22, %s418_s22 }
  0x3f   :  { %620 = vmatpush3.bf16.msra.mxu1 %v619_v58 }
  0x40   :  { %621 = vmatprep.subr.bf16.mxu1 %v753_v2  ;;  %594 = vmatpush3.bf16.msra.mxu0 %v593_v3 }
  0x41   :  { %596 = vmatprep.subr.bf16.mxu0 %v595_v6 }
  0x43   :  { %623 = vmatpush3.bf16.msra.mxu1 %v622_v4 }
  0x44   :  { %624 = vmatprep.subr.bf16.mxu1 %v753_v2  ;;  %598 = vmatpush3.bf16.msra.mxu0 %v597_v12 }
  0x45   :  { %600 = vmatprep.subr.bf16.mxu0 %v599_v14 }
  0x47   :  { %626 = vmatpush3.bf16.msra.mxu1 %v625_v13 }
  0x48   :  { %602 = vmatpush3.bf16.msra.mxu0 %v601_v17 }
  0x49   :  { %627 = vmatprep.subr.bf16.mxu0 %v753_v2 }
  0xa7   :  { %v71_v20 = vpop.permute.xlu1 %70 }
  0xa8   :  { %v56_v21 = vpop.permute.xlu0 %55  ;;  %vm72_vm9 = vcmp.eq.s32.totalorder %v51_v19, %v71_v20  ;;  %vm74_vm11 = vcmp.eq.s32.totalorder %v53_v23, %v71_v20  ;;  %vm73_vm13 = vcmp.eq.s32.totalorder %v52_v22, %v71_v20 }
  0xa9   :  { %vm57_vm1 = vcmp.eq.s32.totalorder %v51_v19, %v56_v21  ;;  %vm58_vm3 = vcmp.eq.s32.totalorder %v52_v22, %v56_v21  ;;  %vm59_vm7 = vcmp.eq.s32.totalorder %v53_v23, %v56_v21 }
  0xac   :  { %v80_v24 = vpop.permute.xlu1 %79 }
  0xad   :  { %v62_v25 = vpop.permute.xlu0 %61  ;;  %vm82_vm15 = vcmp.eq.s32.totalorder %v52_v22, %v80_v24 }
  0xae   :  { %vm63_vm2 = vcmp.eq.s32.totalorder %v51_v19, %v62_v25  ;;  %vm64_vm4 = vcmp.eq.s32.totalorder %v52_v22, %v62_v25  ;;  %vm65_vm5 = vcmp.eq.s32.totalorder %v53_v23, %v62_v25 }
  0xaf   :  { %vm66_vm6 = vmor %vm57_vm1, %vm63_vm2 }
  0xb0   :  { %vm67_vm8 = vmor %vm58_vm3, %vm64_vm4 }
  0xb1   :  { %vm68_vm10 = vmor %vm59_vm7, %vm65_vm5  ;;  %v89_v27 = vpop.permute.xlu1 %88  ;;  %vm83_vm7 = vcmp.eq.s32.totalorder %v53_v23, %v80_v24 }
  0xb2   :  { %vm829_vm12 = vmor %vm66_vm6, %vm72_vm9  ;;  %v98_v28 = vpop.permute.xlu0 %97  ;;  %vm91_vm1 = vcmp.eq.s32.totalorder %v52_v22, %v89_v27  ;;  %vm92_vm4 = vcmp.eq.s32.totalorder %v53_v23, %v89_v27 }
  0xb3   :  { %v873_v26 = vsel %vm829_vm12, 4294967295, %v872_v26  ;;  %vm77_vm14 = vmor %vm68_vm10, %vm74_vm11  ;;  %vm100_vm2 = vcmp.eq.s32.totalorder %v52_v22, %v98_v28  ;;  %vm101_vm6 = vcmp.eq.s32.totalorder %v53_v23, %v98_v28  ;;  %vm90_vm10 = vcmp.eq.s32.totalorder %v51_v19, %v89_v27 }
  0xb4   :  { %vm76_vm0 = vmor %vm67_vm8, %vm73_vm13  ;;  %vm81_vm8 = vcmp.eq.s32.totalorder %v51_v19, %v80_v24  ;;  %vm99_vm13 = vcmp.eq.s32.totalorder %v51_v19, %v98_v28 }
  0xb5   :  { %vm85_vm3 = vmor %vm76_vm0, %vm82_vm15  ;;  %vm874_vm15 = vnez %v873_v26 }
  0xb6   :  { %vm94_vm5 = vmor %vm85_vm3, %vm91_vm1 }
  0xb7   :  { %vm103_vm9 = vmor %vm94_vm5, %vm100_vm2 }
  0xb8   :  { %v428_v29 = vsel %vm103_vm9, 1.0, %v759_v47  ;;  %vm86_vm12 = vmor %vm77_vm14, %vm83_vm7 }
  0xb9   :  { %230 = vmatprep.mubr.f32.mxu0 %v428_v29  ;;  %vm95_vm11 = vmor %vm86_vm12, %vm92_vm4  ;;  %vm875_vm12 = vmmov 0  }
  0xba   :  { %vm104_vm0 = vmor %vm95_vm11, %vm101_vm6 }
  0xbb   :  { %v429_v32 = vsel %vm104_vm0, 1.0, %v759_v47  ;;  %vm84_vm1 = vmor %vm874_vm15, %vm81_vm8 }
  0xbc   :  { %534 = vmatmul.mubr.f32.vlgmr.msra.gmra.mrb[0].mxu1 %v429_v32  ;;  %vm93_vm3 = vmor %vm84_vm1, %vm90_vm10 }
  0xbd   :  { %vm102_vm2 = vmor %vm93_vm3, %vm99_vm13 }
  0xbe   :  { %v427_v36 = vsel %vm102_vm2, 1.0, %v759_v47 }
  0xbf   :  { %231 = vmatmul.mubr.f32.vlgmr.msra.gmra.mrb[0].mxu0 %v427_v36 }
  0xc0   :  { %629 = vmatpush3.bf16.msra.mxu0 %v628_v33  ;;  %568 = vmatprep.mubr.msk.f32.mxu0 %vm875_vm12, %v759_v47  ;;  %v317_v47 = vld [vmem:[#allocation5 + $0x50] sm:$0xff] }
  0xc1   :  { %630 = vmatprep.subr.bf16.mxu0 %v753_v2  ;;  %v643_v49 = vpack.c.bf16 %v318_v48, %v317_v47 }
  0xc4   :  { %632 = vmatpush3.bf16.msra.mxu0 %v631_v37 }
  0xc5   :  { %633 = vmatprep.subr.bf16.mxu0 %v753_v2 }
  0xc8   :  { %635 = vmatpush3.bf16.msra.mxu0 %v634_v40 }
  0xc9   :  { %636 = vmatprep.subr.bf16.mxu0 %v753_v2 }
  0xcc   :  { %638 = vmatpush3.bf16.msra.mxu0 %v637_v43 }
  0xcd   :  { %639 = vmatprep.subr.bf16.mxu0 %v753_v2 }
  0xd0   :  { %641 = vmatpush3.bf16.msra.mxu0 %v640_v46 }
  0xd1   :  { %642 = vmatprep.subr.bf16.mxu0 %v753_v2 }
  0xd4   :  { %644 = vmatpush3.bf16.msra.mxu0 %v643_v49 }
  0xd5   :  { %645 = vmatprep.subr.bf16.mxu0 %v753_v2 }
  0xd8   :  { %647 = vmatpush3.bf16.msra.mxu0 %v646_v52 }
  0xd9   :  { %648 = vmatprep.subr.bf16.mxu0 %v753_v2  ;;  %v431_v2 = vld [vmem:[%s869_s4] ss:$0 sm:$0xff]  ;;  %s719_s4 = scalar_lea.vmem %s418_s22, 128 }
  0xda   :  { %p720_p2 = scmp.ne.s32.totalorder %s418_s22, %s719_s4  ;;  %p725_p4 = scmp.lt.s32.totalorder %s719_s4, %s719_s4 }
  0xdc   :  { %650 = vmatpush3.bf16.msra.mxu0 %v649_v55  ;;  %p726_p5 = por %p725_p4, %p724_p3 }
  0xde   :  { %p727_p6 = pnand %p726_p5, %p720_p2 }
 0x18f   :  { %v302_v56 = vpop.f32.mrb[0].mxu1 }
 0x190   :  { %v535_v57 = vpop.f32.mrb[1].mxu1 }
 0x192   :  { %v464_v58 = vpop.f32.mrb[0].mxu0 }
 0x193   :  { %v465_v60 = vpop.f32.mrb[1].mxu0 }
 0x194   :  { %v466_v61 = vadd.f32 %v465_v60, %v464_v58 }
 0x196   :  { %v233_v62 = vadd.f32 %v466_v61, %v430_v59 }
 0x198   :  { %v303_v63 = vadd.f32 %v302_v56, %v233_v62 }
 0x19a   :  { %v306_v0 = vmax.f32 %v303_v63, 0.0 }
 0x19c   :  { %569 = vmatmul.mubr.f32.vlgmr.msra.gmra.mrb[2].mxu0 %v306_v0 }
 0x26f   :  { %v396_v1 = vpop.f32.mrb[2].mxu0 }
 0x270   :  { %v397_v3 = vadd.f32 %v431_v2, %v396_v1  ;;  %v570_v4 = vpop.f32.mrb[3].mxu0 }
 0x272   :  { %400 = vmax.xlane.f32.xlu1 %v397_v3 }
 0x2ff   :  { %v401_v5 = vpop.xlane.xlu1 %400 }
 0x300   :  { %v402_v6 = vsub.f32 %v397_v3, %v401_v5 }
 0x302   :  { %v403_v7 = vmul.f32 1.442695, %v402_v6 }
 0x304   :  { %671 = vpow2.f32 %v403_v7 }
 0x30e   :  { %v672_v8 = vpop.eup %671 }
 0x30f   :  { %405 = vadd.xlane.f32.xlu0 %v672_v8 }
 0x39c   :  { %v406_v9 = vpop.xlane.xlu0 %405 }
 0x39d   :  { %673 = vlog2.f32 %v406_v9 }
 0x3a7   :  { %v674_v10 = vpop.eup %673 }
 0x3a8   :  { %v408_v11 = vmul.f32 0.6931472, %v674_v10 }
 0x3aa   :  { %v409_v12 = vsub.f32 %v402_v6, %v408_v11 }
 0x3ac   :  { %410 = vst [vmem:[#allocation7] sm:$0xff] %v409_v12 }
 0x3ad   :  { %730 = shalt.err (!%p727_p6)
}
 0x3ae   :  { %s731_s25 = scalar_lea.hbm %s870_s5, 128 }
 0x3af   :  { %p732_p7 = scmp.ne.s32.totalorder %s870_s5, %s731_s25  ;;  %p735_p8 = scmp.lt.u32.totalorder %s731_s25, %s870_s5 }
 0x3b1   :  { %p737_p9 = pnand %p735_p8, %p732_p7 }
 0x3b3   :  { %740 = shalt.err (!%p737_p9)
}
 0x3b4   :  { %420 = dma.vmem_to_hbm [thread:$0]  %s418_s22, 128, %s870_s5, [#allocation4]  }
 0x3b5   :  { %745 = dma.done.wait [#allocation4], 128  }
 0x3b6   :  { %746 = vsyncadd [#allocation4], 4294967168 }
 0x3b7   :  { %424 = vsyncpa [#allocation3], 1 }
 0x3b8   :  { %425 = vsyncpa [#allocation6], 1 }
 0x3b9   :  { %426 = vsyncpa [#allocation4], 1 }

</bundles_post_ra>
